<compile_context>
chip_gen: v7x
topology: tpu7x:2x2x1
jax: 0.10.0
libtpu: 0.0.40
codegen_flags: <defaults>
</compile_context>

<pallas_src>
import functools

import jax
import jax.numpy as jnp
from jax.experimental import pallas as pl
from jax.experimental.pallas import tpu as pltpu

LN_EPS = 1e-5      # RoBERTa layer_norm_eps
NEG_INF = -1e9


# ------------------------------ helpers -----------------------------------

def _choose_tile(dim, target, align):
    """Largest tile <= target that divides `dim` and respects TPU alignment.
    Falls back to the full dim (always legal as a BlockSpec) when no aligned
    divisor exists or the dim is already small."""
    if dim <= target or dim % align != 0:
        return dim
    t = (target // align) * align
    while t >= align:
        if dim % t == 0:
            return t
        t -= align
    return dim


def _gelu(x):
    # tanh-approximate GELU (HF "gelu" to ~1e-3); computed in f32.
    c = 0.7978845608028654  # sqrt(2/pi)
    return 0.5 * x * (1.0 + jnp.tanh(c * (x + 0.044715 * x * x * x)))


# -------------------- fused tiled linear (+epilogue) -----------------------

def _fused_linear_kernel(*refs, activation, has_residual, has_ln):
    # refs: x, w, b, [residual], [ln_g, ln_b], out, acc
    idx = 0
    x_ref = refs[idx]; idx += 1
    w_ref = refs[idx]; idx += 1
    b_ref = refs[idx]; idx += 1
    res_ref = None
    if has_residual:
        res_ref = refs[idx]; idx += 1
    g_ref = beta_ref = None
    if has_ln:
        g_ref = refs[idx]; beta_ref = refs[idx + 1]; idx += 2
    o_ref = refs[idx]
    acc_ref = refs[idx + 1]

    k = pl.program_id(2)

    @pl.when(k == 0)
    def _():
        acc_ref[...] = jnp.zeros_like(acc_ref)

    acc_ref[...] += jnp.dot(x_ref[...], w_ref[...],
                            preferred_element_type=jnp.float32)

    @pl.when(k == pl.num_programs(2) - 1)
    def _():
        h = acc_ref[...] + b_ref[...]
        if has_residual:
            h = h + res_ref[...].astype(jnp.float32)
        if activation == "gelu":
            h = _gelu(h)
        elif activation == "tanh":
            h = jnp.tanh(h)
        if has_ln:
            mu = jnp.mean(h, axis=-1, keepdims=True)
            var = jnp.mean((h - mu) ** 2, axis=-1, keepdims=True)
            h = (h - mu) * jax.lax.rsqrt(var + LN_EPS)
            h = h * g_ref[...] + beta_ref[...]
        o_ref[...] = h.astype(o_ref.dtype)


def fused_linear(x, w, b, *, residual=None, ln=None, activation=None,
                 out_dtype=jnp.float32, tm=256, tn=512, tk=512):
    """act(x @ w + b [+ residual]) [-> LayerNorm].

    MXU operands are bf16, accumulation is f32 in VMEM scratch; the epilogue
    (bias / residual / activation / LayerNorm) is fused into the last K step.
    Grid is (M-tiles, N-tiles, K-tiles) with "parallel" M/N axes.
    """
    M, K = x.shape
    Kw, N = w.shape
    assert K == Kw
    tm = _choose_tile(M, tm, 8)
    tk = _choose_tile(K, tk, 128)
    if ln is not None:
        tn = N          # LayerNorm normalizes over the full feature dim
    else:
        tn = _choose_tile(N, tn, 128)
    grid = (M // tm, N // tn, K // tk)

    x = x.astype(jnp.bfloat16)
    w = w.astype(jnp.bfloat16)

    in_specs = [
        pl.BlockSpec((tm, tk), lambda i, j, k: (i, k)),
        pl.BlockSpec((tk, tn), lambda i, j, k: (k, j)),
        pl.BlockSpec((1, tn), lambda i, j, k: (0, j)),
    ]
    args = [x, w, b.reshape(1, N).astype(jnp.float32)]
    if residual is not None:
        in_specs.append(pl.BlockSpec((tm, tn), lambda i, j, k: (i, j)))
        args.append(residual)
    if ln is not None:
        gamma, beta = ln
        in_specs.append(pl.BlockSpec((1, tn), lambda i, j, k: (0, j)))
        in_specs.append(pl.BlockSpec((1, tn), lambda i, j, k: (0, j)))
        args.append(gamma.reshape(1, N).astype(jnp.float32))
        args.append(beta.reshape(1, N).astype(jnp.float32))

    kern = functools.partial(_fused_linear_kernel, activation=activation,
                             has_residual=residual is not None,
                             has_ln=ln is not None)
    return pl.pallas_call(
        kern,
        out_shape=jax.ShapeDtypeStruct((M, N), out_dtype),
        grid=grid,
        in_specs=in_specs,
        out_specs=pl.BlockSpec((tm, tn), lambda i, j, k: (i, j)),
        scratch_shapes=[pltpu.VMEM((tm, tn), jnp.float32)],
        compiler_params=pltpu.CompilerParams(
            dimension_semantics=("parallel", "parallel", "arbitrary")),
    )(*args)


# ----------------------------- LayerNorm -----------------------------------

def _layernorm_kernel(x_ref, g_ref, b_ref, o_ref):
    x = x_ref[...].astype(jnp.float32)
    mu = jnp.mean(x, axis=-1, keepdims=True)
    var = jnp.mean((x - mu) ** 2, axis=-1, keepdims=True)
    o_ref[...] = ((x - mu) * jax.lax.rsqrt(var + LN_EPS) * g_ref[...]
                  + b_ref[...]).astype(o_ref.dtype)


def layernorm(x, gamma, beta, *, tm=512):
    """Row-tiled LayerNorm over the last dim; used for the embedding LN."""
    M, D = x.shape
    tm = _choose_tile(M, tm, 8)
    return pl.pallas_call(
        _layernorm_kernel,
        out_shape=jax.ShapeDtypeStruct((M, D), jnp.float32),
        grid=(M // tm,),
        in_specs=[pl.BlockSpec((tm, D), lambda i: (i, 0)),
                  pl.BlockSpec((1, D), lambda i: (0, 0)),
                  pl.BlockSpec((1, D), lambda i: (0, 0))],
        out_specs=pl.BlockSpec((tm, D), lambda i: (i, 0)),
        compiler_params=pltpu.CompilerParams(
            dimension_semantics=("parallel",)),
    )(x, gamma.reshape(1, D).astype(jnp.float32),
      beta.reshape(1, D).astype(jnp.float32))


# ------------------------------ attention ----------------------------------

def _attn_kernel(qkv_ref, m_ref, o_ref, *, num_heads, head_dim, scale):
    # qkv_ref: (S, 3D) bf16 block for one batch; m_ref: (1, 1, S) f32 bias.
    qkv = qkv_ref[...]
    bias = m_ref[0]                                  # (1, S) f32
    D = num_heads * head_dim
    for h in range(num_heads):                       # static, unrolled at trace
        q = qkv[:, h * head_dim:(h + 1) * head_dim]
        k = qkv[:, D + h * head_dim: D + (h + 1) * head_dim]
        v = qkv[:, 2 * D + h * head_dim: 2 * D + (h + 1) * head_dim]
        s = jnp.dot(q, k.T, preferred_element_type=jnp.float32) * scale + bias
        s = s - jnp.max(s, axis=-1, keepdims=True)
        p = jnp.exp(s)
        p = p * pl.reciprocal(jnp.sum(p, axis=-1, keepdims=True), approx=True)
        ctx = jnp.dot(p.astype(qkv.dtype), v, preferred_element_type=jnp.float32)
        o_ref[:, h * head_dim:(h + 1) * head_dim] = ctx.astype(o_ref.dtype)


def attention(qkv, mask_bias, B, S, H, Dh, scale):
    """qkv: (B*S, 3D) bf16 (q|k|v concatenated on features);
    mask_bias: (B, 1, S) f32 additive bias shared across heads.
    Returns lane-dense (B*S, D) bf16 context (no head transposes needed).
    """
    # TODO(synk): for long sequences (S >= 512) this should become a
    # flash-style KV-tiled online-softmax loop instead of a full (S,S) block.
    D = H * Dh
    kern = functools.partial(_attn_kernel, num_heads=H, head_dim=Dh,
                             scale=scale)
    return pl.pallas_call(
        kern,
        out_shape=jax.ShapeDtypeStruct((B * S, D), jnp.bfloat16),
        grid=(B,),
        in_specs=[pl.BlockSpec((S, 3 * D), lambda b: (b, 0)),
                  pl.BlockSpec((1, 1, S), lambda b: (b, 0, 0))],
        out_specs=pl.BlockSpec((S, D), lambda b: (b, 0)),
        compiler_params=pltpu.CompilerParams(
            dimension_semantics=("parallel",)),
    )(qkv, mask_bias)


# ------------------------- RoBERTa encoder (glue) ---------------------------

def init_params(key, vocab, max_pos, type_vocab, D, inter, n_layers):
    keys = jax.random.split(key, 4 + n_layers)

    def dense(k, din, dout):
        w = (0.02 * jax.random.normal(k, (din, dout), jnp.float32)
             ).astype(jnp.bfloat16)
        return w, jnp.zeros((dout,), jnp.float32)

    params = {
        'word_emb': 0.02 * jax.random.normal(keys[0], (vocab, D), jnp.float32),
        'pos_emb': 0.02 * jax.random.normal(keys[1], (max_pos, D), jnp.float32),
        'type_emb': 0.02 * jax.random.normal(keys[2], (type_vocab, D), jnp.float32),
        'emb_ln_g': jnp.ones((D,), jnp.float32),
        'emb_ln_b': jnp.zeros((D,), jnp.float32),
        'layers': [],
    }
    params['pool_w'], params['pool_b'] = dense(keys[3], D, D)
    for li in range(n_layers):
        lk = jax.random.split(keys[4 + li], 6)
        wq, bq = dense(lk[0], D, D)
        wk, bk = dense(lk[1], D, D)
        wv, bv = dense(lk[2], D, D)
        lp = {
            'wqkv': jnp.concatenate([wq, wk, wv], axis=1),   # (D, 3D) bf16
            'bqkv': jnp.concatenate([bq, bk, bv], axis=0),   # (3D,)  f32
        }
        lp['wo'], lp['bo'] = dense(lk[3], D, D)
        lp['wi'], lp['bi'] = dense(lk[4], D, inter)
        lp['wf'], lp['bf'] = dense(lk[5], inter, D)
        lp['ln1_g'] = jnp.ones((D,), jnp.float32)
        lp['ln1_b'] = jnp.zeros((D,), jnp.float32)
        lp['ln2_g'] = jnp.ones((D,), jnp.float32)
        lp['ln2_b'] = jnp.zeros((D,), jnp.float32)
        params['layers'].append(lp)
    return params


def roberta_forward(params, input_ids, attention_mask, H):
    B, S = input_ids.shape
    D = params['word_emb'].shape[1]
    Dh = D // H
    padding_idx = 1

    # Embeddings (table gathers are glue; LayerNorm runs in a Pallas kernel).
    pos_ids = jnp.cumsum(attention_mask, axis=1) * attention_mask + padding_idx
    emb = (jnp.take(params['word_emb'], input_ids, axis=0)
           + jnp.take(params['pos_emb'], pos_ids, axis=0)
           + params['type_emb'][0][None, None, :])
    x = layernorm(emb.reshape(B * S, D), params['emb_ln_g'], params['emb_ln_b'])

    # Additive attention-mask bias, shared across heads: (B, 1, S) f32.
    mbias = ((1.0 - attention_mask.astype(jnp.float32)) * NEG_INF)[:, None, :]
    scale = 1.0 / (Dh ** 0.5)

    for lp in params['layers']:
        # Fused QKV projection -> (B*S, 3D) bf16.
        qkv = fused_linear(x, lp['wqkv'], lp['bqkv'], out_dtype=jnp.bfloat16)
        # Per-batch attention over all heads, lane-dense (B*S, D) bf16 output.
        ctx = attention(qkv, mbias, B, S, H, Dh, scale)
        # Output projection + residual + LayerNorm1, fused.
        x = fused_linear(ctx, lp['wo'], lp['bo'], residual=x,
                         ln=(lp['ln1_g'], lp['ln1_b']))
        # FFN: (wi + GELU) fused, then (wf + residual + LayerNorm2) fused.
        hidden = fused_linear(x, lp['wi'], lp['bi'], activation='gelu',
                              out_dtype=jnp.bfloat16)
        x = fused_linear(hidden, lp['wf'], lp['bf'], residual=x,
                         ln=(lp['ln2_g'], lp['ln2_b']))

    token_feature = x.reshape(B, S, D)                 # last_hidden_state
    cls = token_feature[:, 0, :]                       # (B, D)
    pooled = fused_linear(cls, params['pool_w'], params['pool_b'],
                          activation='tanh')           # pooler
    return token_feature, pooled


def text_encoder_forward(params, tokens, H):
    # TODO(synk): RobertaTokenizerFast string tokenization has no Pallas
    # equivalent; token ids / attention mask are accepted as precomputed inputs.
    input_ids = tokens['input_ids']
    attention_mask = tokens['attention_mask']
    token_feature, pooled = roberta_forward(params, input_ids, attention_mask, H)
    text_pos = jnp.zeros_like(pooled)
    return {'globle_feature': pooled,                       # pooler_output
            'token_feature': token_feature,                 # last_hidden_state
            'original_fearture': {'last_hidden_state': token_feature,
                                  'pooler_output': pooled},
            'position': text_pos,
            'mask': attention_mask,
            'tokens': tokens}


# --------------------------------- main -------------------------------------

if __name__ == "__main__":
    B, S = 2, 8              # batch, text_max_len
    D, H, INTER = 32, 4, 64  # hidden, heads, intermediate
    LAYERS = 2
    VOCAB, MAX_POS, TYPE_VOCAB = 50, 24, 1

    key = jax.random.PRNGKey(0)
    kp, ki = jax.random.split(key)
    params = init_params(kp, VOCAB, MAX_POS, TYPE_VOCAB, D, INTER, LAYERS)

    ids = jax.random.randint(ki, (B, S), 3, VOCAB, dtype=jnp.int32)
    lengths = jnp.array([S, 5], dtype=jnp.int32)
    mask = (jnp.arange(S)[None, :] < lengths[:, None]).astype(jnp.int32)
    ids = jnp.where(mask == 1, ids, 1)  # RoBERTa pad token id = 1
    tokens = {'input_ids': ids, 'attention_mask': mask}

    out = text_encoder_forward(params, tokens, H)
    jax.block_until_ready(out['globle_feature'])
    jax.block_until_ready(out['token_feature'])
    assert out['globle_feature'].shape == (B, D)
    assert out['token_feature'].shape == (B, S, D)
    assert out['position'].shape == (B, D)
    print("KERNEL_OK")
</pallas_src>

<mosaic_0001>
module attributes {stable_mosaic.version = 11 : i64} {
  func.func @_layernorm_kernel(%arg0: i32, %arg1: memref<16x32xf32, #tpu.memory_space<vmem>>, %arg2: memref<1x32xf32, #tpu.memory_space<vmem>>, %arg3: memref<1x32xf32, #tpu.memory_space<vmem>>, %arg4: memref<16x32xf32, #tpu.memory_space<vmem>>) attributes {dimension_semantics = [#tpu.dimension_semantics<parallel>], iteration_bounds = array<i64: 1>, scalar_prefetch = 0 : i64, scratch_operands = 0 : i64, tpu.core_type = #tpu.core_type<tc>, window_params = [{transform_indices = @transform_0, window_bounds = array<i64: 16, 32>}, {pipeline_mode = #tpu.pipeline_mode<synchronous>, transform_indices = @transform_1, window_bounds = array<i64: 1, 32>}, {pipeline_mode = #tpu.pipeline_mode<synchronous>, transform_indices = @transform_2, window_bounds = array<i64: 1, 32>}, {transform_indices = @transform_3, window_bounds = array<i64: 16, 32>}]} {
    %c0 = arith.constant 0 : index
    %c0_0 = arith.constant 0 : index
    %0 = vector.load %arg1[%c0, %c0_0] : memref<16x32xf32, #tpu.memory_space<vmem>>, vector<16x32xf32>
    %cst = arith.constant dense<0.000000e+00> : vector<16xf32>
    %1 = vector.multi_reduction <add>, %0, %cst [1] : vector<16x32xf32> to vector<16xf32>
    %2 = vector.shape_cast %1 : vector<16xf32> to vector<16x1xf32>
    %cst_1 = arith.constant 3.200000e+01 : f32
    %3 = vector.broadcast %cst_1 : f32 to vector<16x1xf32>
    %4 = arith.divf %2, %3 : vector<16x1xf32>
    %5 = vector.broadcast %4 : vector<16x1xf32> to vector<16x32xf32>
    %6 = arith.subf %0, %5 : vector<16x32xf32>
    %7 = arith.mulf %6, %6 : vector<16x32xf32>
    %cst_2 = arith.constant dense<0.000000e+00> : vector<16xf32>
    %8 = vector.multi_reduction <add>, %7, %cst_2 [1] : vector<16x32xf32> to vector<16xf32>
    %9 = vector.shape_cast %8 : vector<16xf32> to vector<16x1xf32>
    %cst_3 = arith.constant 3.200000e+01 : f32
    %10 = vector.broadcast %cst_3 : f32 to vector<16x1xf32>
    %11 = arith.divf %9, %10 : vector<16x1xf32>
    %12 = vector.broadcast %4 : vector<16x1xf32> to vector<16x32xf32>
    %13 = arith.subf %0, %12 : vector<16x32xf32>
    %cst_4 = arith.constant 9.99999974E-6 : f32
    %14 = vector.broadcast %cst_4 : f32 to vector<16x1xf32>
    %15 = arith.addf %11, %14 : vector<16x1xf32>
    %16 = math.rsqrt %15 : vector<16x1xf32>
    %17 = vector.broadcast %16 : vector<16x1xf32> to vector<16x32xf32>
    %18 = arith.mulf %13, %17 : vector<16x32xf32>
    %c0_5 = arith.constant 0 : index
    %c0_6 = arith.constant 0 : index
    %19 = vector.load %arg2[%c0_5, %c0_6] : memref<1x32xf32, #tpu.memory_space<vmem>>, vector<1x32xf32>
    %20 = vector.broadcast %19 : vector<1x32xf32> to vector<16x32xf32>
    %21 = arith.mulf %18, %20 : vector<16x32xf32>
    %c0_7 = arith.constant 0 : index
    %c0_8 = arith.constant 0 : index
    %22 = vector.load %arg3[%c0_7, %c0_8] : memref<1x32xf32, #tpu.memory_space<vmem>>, vector<1x32xf32>
    %23 = vector.broadcast %22 : vector<1x32xf32> to vector<16x32xf32>
    %24 = arith.addf %21, %23 : vector<16x32xf32>
    %c0_9 = arith.constant 0 : index
    %c0_10 = arith.constant 0 : index
    %25 = vector.load %arg4[%c0_9, %c0_10] : memref<16x32xf32, #tpu.memory_space<vmem>>, vector<16x32xf32>
    tpu.vector_store %arg4[%c0_9, %c0_10], %24 {strides = array<i32>} : memref<16x32xf32, #tpu.memory_space<vmem>>, vector<16x32xf32>,
    return
  }
  func.func @transform_0(%arg0: i32) -> (i32, i32) {
    %c0_i32 = arith.constant 0 : i32
    %c0_i32_0 = arith.constant 0 : i32
    return %arg0, %c0_i32 : i32, i32
  }
  func.func @transform_1(%arg0: i32) -> (i32, i32) {
    %c0_i32 = arith.constant 0 : i32
    %c0_i32_0 = arith.constant 0 : i32
    %c0_i32_1 = arith.constant 0 : i32
    return %c0_i32, %c0_i32_0 : i32, i32
  }
  func.func @transform_2(%arg0: i32) -> (i32, i32) {
    %c0_i32 = arith.constant 0 : i32
    %c0_i32_0 = arith.constant 0 : i32
    %c0_i32_1 = arith.constant 0 : i32
    return %c0_i32, %c0_i32_0 : i32, i32
  }
  func.func @transform_3(%arg0: i32) -> (i32, i32) {
    %c0_i32 = arith.constant 0 : i32
    %c0_i32_0 = arith.constant 0 : i32
    return %arg0, %c0_i32 : i32, i32
  }
}

</mosaic_0001>

<bundles_post_ra>
// kernel: tpu_custom_call.1
= control target key start
LH: loop header
LB: loop body
LE: loop exit
PB: predicated region body
PF: predicated region fallthrough
CT: control target
= control target key end

     0   :  { %8 = vsyncpa [#allocation3], 0  ;;  %s220_s0 = inlined_call_operand.hbm [shape: f32[16,32], index: 0, kind: input, shape index: {}]   ;;  %s221_s1 = inlined_call_operand.vmem [shape: f32[1,32], index: 1, kind: input, shape index: {}]   ;;  %s222_s2 = inlined_call_operand.vmem [shape: f32[1,32], index: 2, kind: input, shape index: {}]   ;;  %s223_s3 = inlined_call_operand.hbm [shape: f32[16,32], index: 3, kind: output, shape index: {}]  }
   0x1   :  { %9 = vsyncpa [#allocation4], 0  ;;  %s154_s12 = smov [#allocation2]   ;;  %s106_s16 = scalar_lea.hbm %s220_s0, 256 }
   0x2   :  { %s15_s13 = sshll.u32 %s154_s12, 4  ;;  %p107_p0 = scmp.ne.s32.totalorder %s220_s0, %s106_s16  ;;  %s16_s13 = int_to_ptr.vmem [resolvable:$true] %s15_s13 }
   0x3   :  { %p110_p1 = scmp.lt.u32.totalorder %s106_s16, %s220_s0 }
   0x5   :  { %p112_p2 = pnand %p110_p1, %p107_p0 }
   0x7   :  { %115 = shalt.err (!%p112_p2)
}
   0x8   :  { %s116_s21 = scalar_lea.vmem %s16_s13, 256  ;;  %p121_p4 = scmp.lt.s32.totalorder %s16_s13, %s16_s13 }
   0x9   :  { %p117_p3 = scmp.ne.s32.totalorder %s16_s13, %s116_s21  ;;  %p122_p5 = scmp.lt.s32.totalorder %s116_s21, %s116_s21 }
   0xb   :  { %p123_p6 = por %p122_p5, %p121_p4 }
   0xd   :  { %p124_p7 = pnand %p123_p6, %p117_p3 }
   0xf   :  { %127 = shalt.err (!%p124_p7)
}
  0x10   :  { %s155_s22 = smov 128   ;;  %s156_s23 = smov 8  }
  0x11   :  { %21 = dma.hbm_to_vmem [thread:$0]  %s220_s0, 256, %s16_s13, [#allocation3], %s155_s22, %s155_s22, %s156_s23  }
  0x12   :  { %150 = dma.done.wait [#allocation3], 256  }
  0x13   :  { %151 = vsyncadd [#allocation3], 4294967040  ;;  %vm31_vm0 = vcmask 261120   ;;  %v29_v0 = vld [vmem:[#allocation2] sm:$0xff]  ;;  %v30_v1 = vld [vmem:[#allocation2 + $0x8] sm:$0xff]  ;;  %s157_s29 = smov [#allocation5]  }
  0x14   :  { %v32_v2 = vsel %vm31_vm0, %v29_v0, 0.0  ;;  %v35_v3 = vsel %vm31_vm0, %v30_v1, 0.0  ;;  %v96_v21 = vld [vmem:[%s221_s1] ss:$0 sm:$0xff]  ;;  %s84_s30 = sshll.u32 %s157_s29, 4  ;;  %s85_s30 = int_to_ptr.vmem [resolvable:$true] %s84_s30 }
  0x15   :  { %33 = vadd.xlane.f32.xlu0 %v32_v2  ;;  %v97_v23 = vld [vmem:[%s222_s2] ss:$0 sm:$0xff]  ;;  %s128_s4 = scalar_lea.vmem %s85_s30, 256  ;;  %p133_p9 = scmp.lt.s32.totalorder %s85_s30, %s85_s30 }
  0x16   :  { %p129_p8 = scmp.ne.s32.totalorder %s85_s30, %s128_s4  ;;  %p134_p10 = scmp.lt.s32.totalorder %s128_s4, %s128_s4 }
  0x18   :  { %p135_p11 = por %p134_p10, %p133_p9 }
  0x19   :  { %36 = vadd.xlane.f32.xlu0 %v35_v3 }
  0x1a   :  { %p136_p12 = pnand %p135_p11, %p129_p8 }
  0xa2   :  { %v34_v4 = vpop.xlane.xlu0 %33 }
  0xa3   :  { %v39_v5 = vmul.f32 0.03125, %v34_v4 }
  0xa5   :  { %v41_v6 = vsub.f32 %v29_v0, %v39_v5 }
  0xa6   :  { %v37_v7 = vpop.xlane.xlu0 %36 }
  0xa7   :  { %v40_v8 = vmul.f32 0.03125, %v37_v7  ;;  %v43_v9 = vmul.f32 %v41_v6, %v41_v6 }
  0xa9   :  { %v42_v10 = vsub.f32 %v30_v1, %v40_v8  ;;  %v45_v11 = vsel %vm31_vm0, %v43_v9, 0.0 }
  0xaa   :  { %46 = vadd.xlane.f32.xlu1 %v45_v11 }
  0xab   :  { %v44_v12 = vmul.f32 %v42_v10, %v42_v10 }
  0xad   :  { %v48_v13 = vsel %vm31_vm0, %v44_v12, 0.0 }
  0xae   :  { %49 = vadd.xlane.f32.xlu1 %v48_v13 }
 0x137   :  { %v47_v14 = vpop.xlane.xlu1 %46 }
 0x138   :  { %v51_v15 = vmul.f32 0.03125, %v47_v14 }
 0x13a   :  { %v53_v16 = vadd.f32 1e-05, %v51_v15 }
 0x13b   :  { %v50_v17 = vpop.xlane.xlu1 %49 }
 0x13c   :  { %102 = vrsqrt.f32 %v53_v16  ;;  %v52_v18 = vmul.f32 0.03125, %v50_v17 }
 0x13e   :  { %v54_v19 = vadd.f32 1e-05, %v52_v18 }
 0x140   :  { %104 = vrsqrt.f32 %v54_v19 }
 0x146   :  { %v103_v20 = vpop.eup %102 }
 0x147   :  { %v57_v22 = vmul.f32 %v103_v20, %v41_v6 }
 0x149   :  { %v66_v24 = vmul.f32 %v96_v21, %v57_v22 }
 0x14a   :  { %v105_v25 = vpop.eup %104 }
 0x14b   :  { %v58_v26 = vmul.f32 %v105_v25, %v42_v10  ;;  %v75_v27 = vadd.f32 %v97_v23, %v66_v24 }
 0x14d   :  { %v67_v28 = vmul.f32 %v96_v21, %v58_v26  ;;  %77 = vst.msk [vmem:[#allocation5] sm:$0xff] %vm31_vm0, %v75_v27 }
 0x14f   :  { %v76_v29 = vadd.f32 %v97_v23, %v67_v28 }
 0x151   :  { %78 = vst.msk [vmem:[#allocation5 + $0x8] sm:$0xff] %vm31_vm0, %v76_v29 }
 0x152   :  { %139 = shalt.err (!%p136_p12)
}
 0x153   :  { %s140_s5 = scalar_lea.hbm %s223_s3, 256 }
 0x154   :  { %p141_p13 = scmp.ne.s32.totalorder %s223_s3, %s140_s5  ;;  %p144_p0 = scmp.lt.u32.totalorder %s140_s5, %s223_s3 }
 0x156   :  { %p146_p1 = pnand %p144_p0, %p141_p13 }
 0x158   :  { %149 = shalt.err (!%p146_p1)
}
 0x159   :  { %90 = dma.vmem_to_hbm [thread:$0]  %s85_s30, 256, %s223_s3, [#allocation4], %s155_s22, %s155_s22, %s156_s23  }
 0x15a   :  { %152 = dma.done.wait [#allocation4], 256  }
 0x15b   :  { %153 = vsyncadd [#allocation4], 4294967040 }
 0x15c   :  { %94 = vsyncpa [#allocation3], 1 }
 0x15d   :  { %95 = vsyncpa [#allocation4], 1 }

</bundles_post_ra>
